<compile_context>
chip_gen: v6e
topology: v6e:2x2x1
jax: 0.10.0
libtpu: 0.0.40
codegen_flags: <defaults>
</compile_context>

<pallas_src>
import functools

import jax
import jax.numpy as jnp
from jax import lax
from jax.experimental import pallas as pl
from jax.experimental.pallas import tpu as pltpu

K_NEIGHBORS = 4    # kNN grouping size used by PointConv
MAX_TILE_M = 2048  # point-tile width; bf16 double-buffered footprint is < 1 MiB, far
                   # under the 32 MiB scoped VMEM default on every generation (incl. v7x)


def _round_up(x, m):
    return (x + m - 1) // m * m


def _pick_tile(m):
    return min(MAX_TILE_M, _round_up(max(m, 1), 128))


def _param_spec(shape):
    nd = len(shape)
    return pl.BlockSpec(shape, lambda i, _nd=nd: (0,) * _nd)


# --------------------------------------------------------------------------------------
# Pallas kernels
# --------------------------------------------------------------------------------------
def pointconv_kernel(g_ref, w_ref, b_ref, o_ref):
    """Shared 1x1 MLP over grouped neighbors + max-pool over K neighbors.

    g_ref: (K, Cin+3, TILE_M) bf16   grouped neighbor features (points on lanes)
    w_ref: (Cout, Cin+3)      bf16
    b_ref: (Cout, 1)          f32
    o_ref: (Cout, TILE_M)
    """
    kk = g_ref.shape[0]
    # k=0 initialises the accumulator; bias + ReLU hoisted out of the K loop
    # (valid: b is k-invariant and ReLU is monotone).
    acc = jnp.dot(w_ref[...], g_ref[0], preferred_element_type=jnp.float32)
    for k in range(1, kk):  # K is tiny & static -> unrolled
        acc = jnp.maximum(
            acc, jnp.dot(w_ref[...], g_ref[k], preferred_element_type=jnp.float32))
    o_ref[...] = jnp.maximum(acc + b_ref[...], 0.0).astype(o_ref.dtype)


def pointconv_mlp_kernel(g_ref, wp_ref, bp_ref, w1_ref, b1_ref, w2_ref, b2_ref,
                         w3_ref, b3_ref, o_ref):
    """Fused PointConv2 -> mlp1 -> mlp2 -> mlp3 on one point tile (no HBM round trip).

    g_ref: (K, Cin+3, TILE_M) bf16; wp: (8, 11); w1: (6, 8); w2/w3: (6, 6); biases (C, 1) f32
    o_ref: (6, TILE_M) f32
    """
    kk = g_ref.shape[0]
    acc = jnp.dot(wp_ref[...], g_ref[0], preferred_element_type=jnp.float32)
    for k in range(1, kk):
        acc = jnp.maximum(
            acc, jnp.dot(wp_ref[...], g_ref[k], preferred_element_type=jnp.float32))
    h = jnp.maximum(acc + bp_ref[...], 0.0)                        # (8, TILE_M) f32

    h = jnp.dot(w1_ref[...], h.astype(jnp.bfloat16),
                preferred_element_type=jnp.float32) + b1_ref[...]
    h = jnp.maximum(h, 0.0)
    h = jnp.dot(w2_ref[...], h.astype(jnp.bfloat16),
                preferred_element_type=jnp.float32) + b2_ref[...]
    h = jnp.maximum(h, 0.0)
    h = jnp.dot(w3_ref[...], h.astype(jnp.bfloat16),
                preferred_element_type=jnp.float32) + b3_ref[...]
    h = jnp.maximum(h, 0.0)  # TODO(synk): ReLU after mlp3 assumed (MLP def not provided)
    o_ref[...] = h.astype(o_ref.dtype)


# --------------------------------------------------------------------------------------
# XLA glue: sampling, kNN, neighbor gather, grouped-tensor construction
# --------------------------------------------------------------------------------------
def _pointconv_glue(x, geo, n_out, k):
    """x: [B, Cin, N] (any float dtype), geo: [B, 3, N] f32.

    Returns grouped (k, Cin+3, B*n_out) bf16 (points on the last axis) and
    new_geo [B, 3, n_out] f32.
    """
    B, cin, N = x.shape
    # TODO(synk): original PointConv likely uses farthest-point sampling; deterministic
    #             even-strided sampling is used instead.
    samp_idx = (jnp.arange(n_out) * N) // n_out
    new_geo = geo[:, :, samp_idx]                                        # [B, 3, n_out]

    # kNN of sampled points against all input points.
    d = jnp.sum((new_geo[:, :, :, None] - geo[:, :, None, :]) ** 2, axis=1)  # [B,n_out,N]
    _, nn_idx = lax.top_k(-d, k)                                         # [B, n_out, k]

    idx_flat = nn_idx.reshape(B, 1, n_out * k)
    nbr_f = jnp.take_along_axis(x, idx_flat, axis=2).reshape(B, cin, n_out, k)
    nbr_g = jnp.take_along_axis(geo, idx_flat, axis=2).reshape(B, 3, n_out, k)
    rel = nbr_g - new_geo[:, :, :, None]                                 # [B, 3, n_out, k]

    grouped = jnp.concatenate([nbr_f.astype(jnp.float32), rel], axis=1)  # [B, cin+3, n_out, k]
    grouped = jnp.transpose(grouped, (3, 1, 0, 2)).reshape(k, cin + 3, B * n_out)
    return grouped.astype(jnp.bfloat16), new_geo


def _pad_points(grouped, tile_m):
    m = grouped.shape[-1]
    m_pad = _round_up(m, tile_m)
    if m_pad != m:
        grouped = jnp.pad(grouped, ((0, 0), (0, 0), (0, m_pad - m)))
    return grouped, m_pad


# --------------------------------------------------------------------------------------
# Module wrappers
# --------------------------------------------------------------------------------------
def point_conv(x, geo, w, b, n_out, k=K_NEIGHBORS, out_dtype=jnp.bfloat16):
    """x: [B, Cin, N], geo: [B, 3, N] -> ([B, Cout, n_out], [B, 3, n_out])."""
    B = x.shape[0]
    cout, cinp3 = w.shape
    grouped, new_geo = _pointconv_glue(x, geo, n_out, k)
    M = B * n_out
    tile_m = _pick_tile(M)
    grouped, m_pad = _pad_points(grouped, tile_m)

    out = pl.pallas_call(
        pointconv_kernel,
        grid=(m_pad // tile_m,),
        out_shape=jax.ShapeDtypeStruct((cout, m_pad), out_dtype),
        in_specs=[
            pl.BlockSpec((k, cinp3, tile_m), lambda i: (0, 0, i)),
            _param_spec((cout, cinp3)),
            _param_spec((cout, 1)),
        ],
        out_specs=pl.BlockSpec((cout, tile_m), lambda i: (0, i)),
        compiler_params=pltpu.CompilerParams(dimension_semantics=("parallel",)),
    )(grouped, w.astype(jnp.bfloat16), b)

    out = out[:, :M].reshape(cout, B, n_out).transpose(1, 0, 2)          # [B, Cout, n_out]
    return out, new_geo


def point_conv_mlp(x, geo, params, n_out, k=K_NEIGHBORS):
    """Fused PointConv2 + mlp1/mlp2/mlp3: [B, 8, N] -> ([B, 6, n_out], [B, 3, n_out])."""
    B = x.shape[0]
    wp, bp = params["pc2_w"], params["pc2_b"]
    cout = params["w3"].shape[0]
    cinp3 = wp.shape[1]
    grouped, new_geo = _pointconv_glue(x, geo, n_out, k)
    M = B * n_out
    tile_m = _pick_tile(M)
    grouped, m_pad = _pad_points(grouped, tile_m)

    out = pl.pallas_call(
        pointconv_mlp_kernel,
        grid=(m_pad // tile_m,),
        out_shape=jax.ShapeDtypeStruct((cout, m_pad), jnp.float32),
        in_specs=[
            pl.BlockSpec((k, cinp3, tile_m), lambda i: (0, 0, i)),
            _param_spec(wp.shape), _param_spec(bp.shape),
            _param_spec(params["w1"].shape), _param_spec(params["b1"].shape),
            _param_spec(params["w2"].shape), _param_spec(params["b2"].shape),
            _param_spec(params["w3"].shape), _param_spec(params["b3"].shape),
        ],
        out_specs=pl.BlockSpec((cout, tile_m), lambda i: (0, i)),
        compiler_params=pltpu.CompilerParams(dimension_semantics=("parallel",)),
    )(grouped,
      wp.astype(jnp.bfloat16), bp,
      params["w1"].astype(jnp.bfloat16), params["b1"],
      params["w2"].astype(jnp.bfloat16), params["b2"],
      params["w3"].astype(jnp.bfloat16), params["b3"])

    out = out[:, :M].reshape(cout, B, n_out).transpose(1, 0, 2)          # [B, 6, n_out]
    return out, new_geo


def init_params(key):
    """Deterministic parameter init; shapes follow HyperEncoder(__init__) (W as [Cout, Cin])."""
    ks = jax.random.split(key, 10)
    s = 0.2
    return {
        # PointConv1: featurein=8 (+3 rel-xyz) -> featureout=8
        "pc1_w": s * jax.random.normal(ks[0], (8, 8 + 3), jnp.float32),
        "pc1_b": s * jax.random.normal(ks[1], (8, 1), jnp.float32),
        # PointConv2: featurein=8 (+3) -> featureout=8
        "pc2_w": s * jax.random.normal(ks[2], (8, 8 + 3), jnp.float32),
        "pc2_b": s * jax.random.normal(ks[3], (8, 1), jnp.float32),
        # mlp1: 8 -> 6, mlp2: 6 -> 6, mlp3: 6 -> 6
        "w1": s * jax.random.normal(ks[4], (6, 8), jnp.float32),
        "b1": s * jax.random.normal(ks[5], (6, 1), jnp.float32),
        "w2": s * jax.random.normal(ks[6], (6, 6), jnp.float32),
        "b2": s * jax.random.normal(ks[7], (6, 1), jnp.float32),
        "w3": s * jax.random.normal(ks[8], (6, 6), jnp.float32),
        "b3": s * jax.random.normal(ks[9], (6, 1), jnp.float32),
    }


def hyper_encoder(params, x, geoin, Ns):
    """Mirrors HyperEncoder.forward: PointConv1 -> (PointConv2 + mlp1..mlp3 fused)."""
    x, geo = point_conv(x, geoin, params["pc1_w"], params["pc1_b"], n_out=Ns // 2)
    x, geo_ = point_conv_mlp(x, geo, params, n_out=Ns // 4)
    return x, geo_


if __name__ == "__main__":
    key = jax.random.PRNGKey(0)
    kx, kg, kp = jax.random.split(key, 3)

    B, Ns, Fin = 2, 16, 8                       # Ns points, 8 input feature channels
    x = jax.random.normal(kx, (B, Fin, Ns), jnp.float32)      # [B, 8, N]  (NCW)
    geoin = jax.random.normal(kg, (B, 3, Ns), jnp.float32)    # [B, 3, N]
    params = init_params(kp)

    fwd = jax.jit(functools.partial(hyper_encoder, Ns=Ns))
    out_x, out_geo = fwd(params, x, geoin)
    jax.block_until_ready((out_x, out_geo))

    assert out_x.shape == (B, 6, Ns // 4), out_x.shape
    assert out_geo.shape == (B, 3, Ns // 4), out_geo.shape
    print("KERNEL_OK")
</pallas_src>

<mosaic_0001>
module attributes {stable_mosaic.version = 11 : i64} {
  func.func @pointconv_kernel(%arg0: i32, %arg1: memref<4x11x128xbf16, #tpu.memory_space<vmem>>, %arg2: memref<8x11xbf16, #tpu.memory_space<vmem>>, %arg3: memref<8x1xf32, #tpu.memory_space<vmem>>, %arg4: memref<8x128xbf16, #tpu.memory_space<vmem>>) attributes {dimension_semantics = [#tpu.dimension_semantics<parallel>], iteration_bounds = array<i64: 1>, scalar_prefetch = 0 : i64, scratch_operands = 0 : i64, tpu.core_type = #tpu.core_type<tc>, window_params = [{transform_indices = @transform_0, window_bounds = array<i64: 4, 11, 128>}, {pipeline_mode = #tpu.pipeline_mode<synchronous>, transform_indices = @transform_1, window_bounds = array<i64: 8, 11>}, {pipeline_mode = #tpu.pipeline_mode<synchronous>, transform_indices = @transform_2, window_bounds = array<i64: 8, 1>}, {transform_indices = @transform_3, window_bounds = array<i64: 8, 128>}]} {
    %c0 = arith.constant 0 : index
    %c0_0 = arith.constant 0 : index
    %0 = vector.load %arg2[%c0, %c0_0] : memref<8x11xbf16, #tpu.memory_space<vmem>>, vector<8x11xbf16>
    %c0_1 = arith.constant 0 : index
    %c0_2 = arith.constant 0 : index
    %c0_3 = arith.constant 0 : index
    %1 = vector.load %arg1[%c0_1, %c0_2, %c0_3] : memref<4x11x128xbf16, #tpu.memory_space<vmem>>, vector<1x11x128xbf16>
    %2 = vector.shape_cast %1 : vector<1x11x128xbf16> to vector<11x128xbf16>
    %cst = arith.constant dense<0.000000e+00> : vector<8x128xf32>
    %3 = tpu.matmul %0, %2, %cst {dimension_numbers = #tpu.dot_dimension_numbers<[1], [0], [0], [1], [0, 0, 1, 1], [], []>} : vector<8x11xbf16>, vector<11x128xbf16>, vector<8x128xf32> -> vector<8x128xf32>
    %c0_4 = arith.constant 0 : index
    %c0_5 = arith.constant 0 : index
    %4 = vector.load %arg2[%c0_4, %c0_5] : memref<8x11xbf16, #tpu.memory_space<vmem>>, vector<8x11xbf16>
    %c1 = arith.constant 1 : index
    %c0_6 = arith.constant 0 : index
    %c0_7 = arith.constant 0 : index
    %5 = vector.load %arg1[%c1, %c0_6, %c0_7] : memref<4x11x128xbf16, #tpu.memory_space<vmem>>, vector<1x11x128xbf16>
    %6 = vector.shape_cast %5 : vector<1x11x128xbf16> to vector<11x128xbf16>
    %cst_8 = arith.constant dense<0.000000e+00> : vector<8x128xf32>
    %7 = tpu.matmul %4, %6, %cst_8 {dimension_numbers = #tpu.dot_dimension_numbers<[1], [0], [0], [1], [0, 0, 1, 1], [], []>} : vector<8x11xbf16>, vector<11x128xbf16>, vector<8x128xf32> -> vector<8x128xf32>
    %8 = arith.maximumf %3, %7 : vector<8x128xf32>
    %c0_9 = arith.constant 0 : index
    %c0_10 = arith.constant 0 : index
    %9 = vector.load %arg2[%c0_9, %c0_10] : memref<8x11xbf16, #tpu.memory_space<vmem>>, vector<8x11xbf16>
    %c2 = arith.constant 2 : index
    %c0_11 = arith.constant 0 : index
    %c0_12 = arith.constant 0 : index
    %10 = vector.load %arg1[%c2, %c0_11, %c0_12] : memref<4x11x128xbf16, #tpu.memory_space<vmem>>, vector<1x11x128xbf16>
    %11 = vector.shape_cast %10 : vector<1x11x128xbf16> to vector<11x128xbf16>
    %cst_13 = arith.constant dense<0.000000e+00> : vector<8x128xf32>
    %12 = tpu.matmul %9, %11, %cst_13 {dimension_numbers = #tpu.dot_dimension_numbers<[1], [0], [0], [1], [0, 0, 1, 1], [], []>} : vector<8x11xbf16>, vector<11x128xbf16>, vector<8x128xf32> -> vector<8x128xf32>
    %13 = arith.maximumf %8, %12 : vector<8x128xf32>
    %c0_14 = arith.constant 0 : index
    %c0_15 = arith.constant 0 : index
    %14 = vector.load %arg2[%c0_14, %c0_15] : memref<8x11xbf16, #tpu.memory_space<vmem>>, vector<8x11xbf16>
    %c3 = arith.constant 3 : index
    %c0_16 = arith.constant 0 : index
    %c0_17 = arith.constant 0 : index
    %15 = vector.load %arg1[%c3, %c0_16, %c0_17] : memref<4x11x128xbf16, #tpu.memory_space<vmem>>, vector<1x11x128xbf16>
    %16 = vector.shape_cast %15 : vector<1x11x128xbf16> to vector<11x128xbf16>
    %cst_18 = arith.constant dense<0.000000e+00> : vector<8x128xf32>
    %17 = tpu.matmul %14, %16, %cst_18 {dimension_numbers = #tpu.dot_dimension_numbers<[1], [0], [0], [1], [0, 0, 1, 1], [], []>} : vector<8x11xbf16>, vector<11x128xbf16>, vector<8x128xf32> -> vector<8x128xf32>
    %18 = arith.maximumf %13, %17 : vector<8x128xf32>
    %c0_19 = arith.constant 0 : index
    %c0_20 = arith.constant 0 : index
    %19 = vector.load %arg3[%c0_19, %c0_20] : memref<8x1xf32, #tpu.memory_space<vmem>>, vector<8x1xf32>
    %20 = vector.broadcast %19 : vector<8x1xf32> to vector<8x128xf32>
    %21 = arith.addf %18, %20 : vector<8x128xf32>
    %cst_21 = arith.constant 0.000000e+00 : f32
    %22 = vector.broadcast %cst_21 : f32 to vector<8x128xf32>
    %23 = arith.maximumf %21, %22 : vector<8x128xf32>
    %24 = arith.truncf %23 : vector<8x128xf32> to vector<8x128xbf16>
    %c0_22 = arith.constant 0 : index
    %c0_23 = arith.constant 0 : index
    %25 = vector.load %arg4[%c0_22, %c0_23] : memref<8x128xbf16, #tpu.memory_space<vmem>>, vector<8x128xbf16>
    tpu.vector_store %arg4[%c0_22, %c0_23], %24 {strides = array<i32>} : memref<8x128xbf16, #tpu.memory_space<vmem>>, vector<8x128xbf16>,
    return
  }
  func.func @transform_0(%arg0: i32) -> (i32, i32, i32) {
    %c0_i32 = arith.constant 0 : i32
    %c0_i32_0 = arith.constant 0 : i32
    %c0_i32_1 = arith.constant 0 : i32
    return %c0_i32, %c0_i32_0, %arg0 : i32, i32, i32
  }
  func.func @transform_1(%arg0: i32) -> (i32, i32) {
    %c0_i32 = arith.constant 0 : i32
    %c0_i32_0 = arith.constant 0 : i32
    %c0_i32_1 = arith.constant 0 : i32
    return %c0_i32, %c0_i32_0 : i32, i32
  }
  func.func @transform_2(%arg0: i32) -> (i32, i32) {
    %c0_i32 = arith.constant 0 : i32
    %c0_i32_0 = arith.constant 0 : i32
    %c0_i32_1 = arith.constant 0 : i32
    return %c0_i32, %c0_i32_0 : i32, i32
  }
  func.func @transform_3(%arg0: i32) -> (i32, i32) {
    %c0_i32 = arith.constant 0 : i32
    %c0_i32_0 = arith.constant 0 : i32
    return %c0_i32, %arg0 : i32, i32
  }
}

module attributes {stable_mosaic.version = 11 : i64} {
  func.func @pointconv_mlp_kernel(%arg0: i32, %arg1: memref<4x11x128xbf16, #tpu.memory_space<vmem>>, %arg2: memref<8x11xbf16, #tpu.memory_space<vmem>>, %arg3: memref<8x1xf32, #tpu.memory_space<vmem>>, %arg4: memref<6x8xbf16, #tpu.memory_space<vmem>>, %arg5: memref<6x1xf32, #tpu.memory_space<vmem>>, %arg6: memref<6x6xbf16, #tpu.memory_space<vmem>>, %arg7: memref<6x1xf32, #tpu.memory_space<vmem>>, %arg8: memref<6x6xbf16, #tpu.memory_space<vmem>>, %arg9: memref<6x1xf32, #tpu.memory_space<vmem>>, %arg10: memref<6x128xf32, #tpu.memory_space<vmem>>) attributes {dimension_semantics = [#tpu.dimension_semantics<parallel>], iteration_bounds = array<i64: 1>, scalar_prefetch = 0 : i64, scratch_operands = 0 : i64, tpu.core_type = #tpu.core_type<tc>, window_params = [{transform_indices = @transform_0, window_bounds = array<i64: 4, 11, 128>}, {pipeline_mode = #tpu.pipeline_mode<synchronous>, transform_indices = @transform_1, window_bounds = array<i64: 8, 11>}, {pipeline_mode = #tpu.pipeline_mode<synchronous>, transform_indices = @transform_2, window_bounds = array<i64: 8, 1>}, {pipeline_mode = #tpu.pipeline_mode<synchronous>, transform_indices = @transform_3, window_bounds = array<i64: 6, 8>}, {pipeline_mode = #tpu.pipeline_mode<synchronous>, transform_indices = @transform_4, window_bounds = array<i64: 6, 1>}, {pipeline_mode = #tpu.pipeline_mode<synchronous>, transform_indices = @transform_5, window_bounds = array<i64: 6, 6>}, {pipeline_mode = #tpu.pipeline_mode<synchronous>, transform_indices = @transform_6, window_bounds = array<i64: 6, 1>}, {pipeline_mode = #tpu.pipeline_mode<synchronous>, transform_indices = @transform_7, window_bounds = array<i64: 6, 6>}, {pipeline_mode = #tpu.pipeline_mode<synchronous>, transform_indices = @transform_8, window_bounds = array<i64: 6, 1>}, {transform_indices = @transform_9, window_bounds = array<i64: 6, 128>}]} {
    %c0 = arith.constant 0 : index
    %c0_0 = arith.constant 0 : index
    %0 = vector.load %arg2[%c0, %c0_0] : memref<8x11xbf16, #tpu.memory_space<vmem>>, vector<8x11xbf16>
    %c0_1 = arith.constant 0 : index
    %c0_2 = arith.constant 0 : index
    %c0_3 = arith.constant 0 : index
    %1 = vector.load %arg1[%c0_1, %c0_2, %c0_3] : memref<4x11x128xbf16, #tpu.memory_space<vmem>>, vector<1x11x128xbf16>
    %2 = vector.shape_cast %1 : vector<1x11x128xbf16> to vector<11x128xbf16>
    %cst = arith.constant dense<0.000000e+00> : vector<8x128xf32>
    %3 = tpu.matmul %0, %2, %cst {dimension_numbers = #tpu.dot_dimension_numbers<[1], [0], [0], [1], [0, 0, 1, 1], [], []>} : vector<8x11xbf16>, vector<11x128xbf16>, vector<8x128xf32> -> vector<8x128xf32>
    %c0_4 = arith.constant 0 : index
    %c0_5 = arith.constant 0 : index
    %4 = vector.load %arg2[%c0_4, %c0_5] : memref<8x11xbf16, #tpu.memory_space<vmem>>, vector<8x11xbf16>
    %c1 = arith.constant 1 : index
    %c0_6 = arith.constant 0 : index
    %c0_7 = arith.constant 0 : index
    %5 = vector.load %arg1[%c1, %c0_6, %c0_7] : memref<4x11x128xbf16, #tpu.memory_space<vmem>>, vector<1x11x128xbf16>
    %6 = vector.shape_cast %5 : vector<1x11x128xbf16> to vector<11x128xbf16>
    %cst_8 = arith.constant dense<0.000000e+00> : vector<8x128xf32>
    %7 = tpu.matmul %4, %6, %cst_8 {dimension_numbers = #tpu.dot_dimension_numbers<[1], [0], [0], [1], [0, 0, 1, 1], [], []>} : vector<8x11xbf16>, vector<11x128xbf16>, vector<8x128xf32> -> vector<8x128xf32>
    %8 = arith.maximumf %3, %7 : vector<8x128xf32>
    %c0_9 = arith.constant 0 : index
    %c0_10 = arith.constant 0 : index
    %9 = vector.load %arg2[%c0_9, %c0_10] : memref<8x11xbf16, #tpu.memory_space<vmem>>, vector<8x11xbf16>
    %c2 = arith.constant 2 : index
    %c0_11 = arith.constant 0 : index
    %c0_12 = arith.constant 0 : index
    %10 = vector.load %arg1[%c2, %c0_11, %c0_12] : memref<4x11x128xbf16, #tpu.memory_space<vmem>>, vector<1x11x128xbf16>
    %11 = vector.shape_cast %10 : vector<1x11x128xbf16> to vector<11x128xbf16>
    %cst_13 = arith.constant dense<0.000000e+00> : vector<8x128xf32>
    %12 = tpu.matmul %9, %11, %cst_13 {dimension_numbers = #tpu.dot_dimension_numbers<[1], [0], [0], [1], [0, 0, 1, 1], [], []>} : vector<8x11xbf16>, vector<11x128xbf16>, vector<8x128xf32> -> vector<8x128xf32>
    %13 = arith.maximumf %8, %12 : vector<8x128xf32>
    %c0_14 = arith.constant 0 : index
    %c0_15 = arith.constant 0 : index
    %14 = vector.load %arg2[%c0_14, %c0_15] : memref<8x11xbf16, #tpu.memory_space<vmem>>, vector<8x11xbf16>
    %c3 = arith.constant 3 : index
    %c0_16 = arith.constant 0 : index
    %c0_17 = arith.constant 0 : index
    %15 = vector.load %arg1[%c3, %c0_16, %c0_17] : memref<4x11x128xbf16, #tpu.memory_space<vmem>>, vector<1x11x128xbf16>
    %16 = vector.shape_cast %15 : vector<1x11x128xbf16> to vector<11x128xbf16>
    %cst_18 = arith.constant dense<0.000000e+00> : vector<8x128xf32>
    %17 = tpu.matmul %14, %16, %cst_18 {dimension_numbers = #tpu.dot_dimension_numbers<[1], [0], [0], [1], [0, 0, 1, 1], [], []>} : vector<8x11xbf16>, vector<11x128xbf16>, vector<8x128xf32> -> vector<8x128xf32>
    %18 = arith.maximumf %13, %17 : vector<8x128xf32>
    %c0_19 = arith.constant 0 : index
    %c0_20 = arith.constant 0 : index
    %19 = vector.load %arg3[%c0_19, %c0_20] : memref<8x1xf32, #tpu.memory_space<vmem>>, vector<8x1xf32>
    %20 = vector.broadcast %19 : vector<8x1xf32> to vector<8x128xf32>
    %21 = arith.addf %18, %20 : vector<8x128xf32>
    %cst_21 = arith.constant 0.000000e+00 : f32
    %22 = vector.broadcast %cst_21 : f32 to vector<8x128xf32>
    %23 = arith.maximumf %21, %22 : vector<8x128xf32>
    %c0_22 = arith.constant 0 : index
    %c0_23 = arith.constant 0 : index
    %24 = vector.load %arg4[%c0_22, %c0_23] : memref<6x8xbf16, #tpu.memory_space<vmem>>, vector<6x8xbf16>
    %25 = arith.truncf %23 : vector<8x128xf32> to vector<8x128xbf16>
    %cst_24 = arith.constant dense<0.000000e+00> : vector<6x128xf32>
    %26 = tpu.matmul %24, %25, %cst_24 {dimension_numbers = #tpu.dot_dimension_numbers<[1], [0], [0], [1], [0, 0, 1, 1], [], []>} : vector<6x8xbf16>, vector<8x128xbf16>, vector<6x128xf32> -> vector<6x128xf32>
    %c0_25 = arith.constant 0 : index
    %c0_26 = arith.constant 0 : index
    %27 = vector.load %arg5[%c0_25, %c0_26] : memref<6x1xf32, #tpu.memory_space<vmem>>, vector<6x1xf32>
    %28 = vector.broadcast %27 : vector<6x1xf32> to vector<6x128xf32>
    %29 = arith.addf %26, %28 : vector<6x128xf32>
    %cst_27 = arith.constant 0.000000e+00 : f32
    %30 = vector.broadcast %cst_27 : f32 to vector<6x128xf32>
    %31 = arith.maximumf %29, %30 : vector<6x128xf32>
    %c0_28 = arith.constant 0 : index
    %c0_29 = arith.constant 0 : index
    %32 = vector.load %arg6[%c0_28, %c0_29] : memref<6x6xbf16, #tpu.memory_space<vmem>>, vector<6x6xbf16>
    %33 = arith.truncf %31 : vector<6x128xf32> to vector<6x128xbf16>
    %cst_30 = arith.constant dense<0.000000e+00> : vector<6x128xf32>
    %34 = tpu.matmul %32, %33, %cst_30 {dimension_numbers = #tpu.dot_dimension_numbers<[1], [0], [0], [1], [0, 0, 1, 1], [], []>} : vector<6x6xbf16>, vector<6x128xbf16>, vector<6x128xf32> -> vector<6x128xf32>
    %c0_31 = arith.constant 0 : index
    %c0_32 = arith.constant 0 : index
    %35 = vector.load %arg7[%c0_31, %c0_32] : memref<6x1xf32, #tpu.memory_space<vmem>>, vector<6x1xf32>
    %36 = vector.broadcast %35 : vector<6x1xf32> to vector<6x128xf32>
    %37 = arith.addf %34, %36 : vector<6x128xf32>
    %cst_33 = arith.constant 0.000000e+00 : f32
    %38 = vector.broadcast %cst_33 : f32 to vector<6x128xf32>
    %39 = arith.maximumf %37, %38 : vector<6x128xf32>
    %c0_34 = arith.constant 0 : index
    %c0_35 = arith.constant 0 : index
    %40 = vector.load %arg8[%c0_34, %c0_35] : memref<6x6xbf16, #tpu.memory_space<vmem>>, vector<6x6xbf16>
    %41 = arith.truncf %39 : vector<6x128xf32> to vector<6x128xbf16>
    %cst_36 = arith.constant dense<0.000000e+00> : vector<6x128xf32>
    %42 = tpu.matmul %40, %41, %cst_36 {dimension_numbers = #tpu.dot_dimension_numbers<[1], [0], [0], [1], [0, 0, 1, 1], [], []>} : vector<6x6xbf16>, vector<6x128xbf16>, vector<6x128xf32> -> vector<6x128xf32>
    %c0_37 = arith.constant 0 : index
    %c0_38 = arith.constant 0 : index
    %43 = vector.load %arg9[%c0_37, %c0_38] : memref<6x1xf32, #tpu.memory_space<vmem>>, vector<6x1xf32>
    %44 = vector.broadcast %43 : vector<6x1xf32> to vector<6x128xf32>
    %45 = arith.addf %42, %44 : vector<6x128xf32>
    %cst_39 = arith.constant 0.000000e+00 : f32
    %46 = vector.broadcast %cst_39 : f32 to vector<6x128xf32>
    %47 = arith.maximumf %45, %46 : vector<6x128xf32>
    %c0_40 = arith.constant 0 : index
    %c0_41 = arith.constant 0 : index
    %48 = vector.load %arg10[%c0_40, %c0_41] : memref<6x128xf32, #tpu.memory_space<vmem>>, vector<6x128xf32>
    tpu.vector_store %arg10[%c0_40, %c0_41], %47 {strides = array<i32>} : memref<6x128xf32, #tpu.memory_space<vmem>>, vector<6x128xf32>,
    return
  }
  func.func @transform_0(%arg0: i32) -> (i32, i32, i32) {
    %c0_i32 = arith.constant 0 : i32
    %c0_i32_0 = arith.constant 0 : i32
    %c0_i32_1 = arith.constant 0 : i32
    return %c0_i32, %c0_i32_0, %arg0 : i32, i32, i32
  }
  func.func @transform_1(%arg0: i32) -> (i32, i32) {
    %c0_i32 = arith.constant 0 : i32
    %c0_i32_0 = arith.constant 0 : i32
    %c0_i32_1 = arith.constant 0 : i32
    return %c0_i32, %c0_i32_0 : i32, i32
  }
  func.func @transform_2(%arg0: i32) -> (i32, i32) {
    %c0_i32 = arith.constant 0 : i32
    %c0_i32_0 = arith.constant 0 : i32
    %c0_i32_1 = arith.constant 0 : i32
    return %c0_i32, %c0_i32_0 : i32, i32
  }
  func.func @transform_3(%arg0: i32) -> (i32, i32) {
    %c0_i32 = arith.constant 0 : i32
    %c0_i32_0 = arith.constant 0 : i32
    %c0_i32_1 = arith.constant 0 : i32
    return %c0_i32, %c0_i32_0 : i32, i32
  }
  func.func @transform_4(%arg0: i32) -> (i32, i32) {
    %c0_i32 = arith.constant 0 : i32
    %c0_i32_0 = arith.constant 0 : i32
    %c0_i32_1 = arith.constant 0 : i32
    return %c0_i32, %c0_i32_0 : i32, i32
  }
  func.func @transform_5(%arg0: i32) -> (i32, i32) {
    %c0_i32 = arith.constant 0 : i32
    %c0_i32_0 = arith.constant 0 : i32
    %c0_i32_1 = arith.constant 0 : i32
    return %c0_i32, %c0_i32_0 : i32, i32
  }
  func.func @transform_6(%arg0: i32) -> (i32, i32) {
    %c0_i32 = arith.constant 0 : i32
    %c0_i32_0 = arith.constant 0 : i32
    %c0_i32_1 = arith.constant 0 : i32
    return %c0_i32, %c0_i32_0 : i32, i32
  }
  func.func @transform_7(%arg0: i32) -> (i32, i32) {
    %c0_i32 = arith.constant 0 : i32
    %c0_i32_0 = arith.constant 0 : i32
    %c0_i32_1 = arith.constant 0 : i32
    return %c0_i32, %c0_i32_0 : i32, i32
  }
  func.func @transform_8(%arg0: i32) -> (i32, i32) {
    %c0_i32 = arith.constant 0 : i32
    %c0_i32_0 = arith.constant 0 : i32
    %c0_i32_1 = arith.constant 0 : i32
    return %c0_i32, %c0_i32_0 : i32, i32
  }
  func.func @transform_9(%arg0: i32) -> (i32, i32) {
    %c0_i32 = arith.constant 0 : i32
    %c0_i32_0 = arith.constant 0 : i32
    return %c0_i32, %arg0 : i32, i32
  }
}

</mosaic_0001>

<bundles_post_ra>
// kernel: neg.2
= control target key start
LH: loop header
LB: loop body
LE: loop exit
PB: predicated region body
PF: predicated region fallthrough
CT: control target
= control target key end

     0   :  { %s40_s0 = inlined_call_operand.vmem [shape: f32[2,8,16], index: 0, kind: input, shape index: {}]   ;;  %s41_s1 = inlined_call_operand.vmem [shape: f32[2,8,16], index: 1, kind: output, shape index: {}]  }
   0x1   :  { %v2_v0 = vld [vmem:[%s40_s0] sm:$0xff]  ;;  %v16_v1 = vld [vmem:[%s40_s0 + $0x8] sm:$0xff] }
   0x2   :  { %v5_v2 = vxor.u32 2147483648, %v2_v0  ;;  %v12_v3 = vxor.u32 2147483648, %v16_v1 }
   0x4   :  { %7 = vst [vmem:[%s41_s1] sm:$0xff] %v5_v2  ;;  %17 = vst [vmem:[%s41_s1 + $0x8] sm:$0xff] %v12_v3 }

// kernel: neg.3
= control target key start
LH: loop header
LB: loop body
LE: loop exit
PB: predicated region body
PF: predicated region fallthrough
CT: control target
= control target key end

     0   :  { %s40_s0 = inlined_call_operand.vmem [shape: f32[2,4,8], index: 0, kind: input, shape index: {}]   ;;  %s41_s1 = inlined_call_operand.vmem [shape: f32[2,4,8], index: 1, kind: output, shape index: {}]  }
   0x1   :  { %v2_v0 = vld [vmem:[%s40_s0] sm:$0xf]  ;;  %v16_v1 = vld [vmem:[%s40_s0 + $0x4] sm:$0xf] }
   0x2   :  { %v5_v2 = vxor.u32 2147483648, %v2_v0  ;;  %v12_v3 = vxor.u32 2147483648, %v16_v1 }
   0x4   :  { %7 = vst [vmem:[%s41_s1] sm:$0xf] %v5_v2  ;;  %17 = vst [vmem:[%s41_s1 + $0x4] sm:$0xf] %v12_v3 }

// kernel: hyper_encoder.2
= control target key start
LH: loop header
LB: loop body
LE: loop exit
PB: predicated region body
PF: predicated region fallthrough
CT: control target
= control target key end

     0   :  { %vm27_vm0 = vcmask 1044480   ;;  %vm28_vm1 = vcmask 1045504   ;;  %v299_v0 = vmov 0.0   ;;  %v300_v2 = vmov 65535   ;;  %s352_s0 = inlined_call_operand.vmem [shape: bf16[4,11,128], index: 0, kind: input, shape index: {}]   ;;  %s353_s1 = inlined_call_operand.vmem [shape: bf16[8,11], index: 1, kind: input, shape index: {}]   ;;  %s354_s2 = inlined_call_operand.vmem [shape: f32[8,1], index: 2, kind: input, shape index: {}]   ;;  %s355_s3 = inlined_call_operand.vmem [shape: bf16[8,128], index: 3, kind: output, shape index: {}]  }
   0x1   :  { %266 = vmatprep.subr.bf16.mxu0 %v299_v0  ;;  %272 = vmatprep.subr.bf16.mxu1 %v299_v0  ;;  %v295_v1 = vld [vmem:[%s352_s0] sm:$0x3f]   ;;  %v29_v3 = vsel %vm27_vm0, 4294967295, %v300_v2  ;;  %v296_v5 = vld [vmem:[%s352_s0 + $0x8] sm:$0x3f]   ;;  %vm301_vm2 = vmmov 0  }
   0x2   :  { %v30_v4 = vsel %vm28_vm1, %v29_v3, 0  ;;  %268 = vmatprep.mubr.msk.bf16.mxu0 %vm301_vm2, %v299_v0  ;;  %274 = vmatprep.mubr.msk.bf16.mxu1 %vm301_vm2, %v299_v0  ;;  %v297_v7 = vld [vmem:[%s352_s0 + $0x10] sm:$0x3f]   ;;  %v298_v9 = vld [vmem:[%s352_s0 + $0x18] sm:$0x3f]   ;;  %vm23_vm3 = vcmask 89088  }
   0x3   :  { %v32_v6 = vand.u32 %v295_v1, %v30_v4  ;;  %v83_v8 = vand.u32 %v296_v5, %v30_v4  ;;  %v15_v10 = vld [vmem:[%s353_s1] sm:$0xf]  ;;  %v135_v11 = vand.u32 %v297_v7, %v30_v4  ;;  %v187_v13 = vand.u32 %v298_v9, %v30_v4 }
   0x4   :  { %v230_v12 = vld [vmem:[%s354_s2] sm:$0xff]  ;;  %v302_v14 = vmov 0  }
   0x5   :  { %267 = vmatpush3.bf16.msra.mxu0 %v32_v6  ;;  %273 = vmatpush3.bf16.msra.mxu1 %v83_v8 }
   0x6   :  { %278 = vmatprep.subr.bf16.mxu0 %v299_v0  ;;  %284 = vmatprep.subr.bf16.mxu1 %v299_v0 }
   0x7   :  { %294 = vset.pattern.permute.xlu0 %v302_v14 }
   0x8   :  { %269 = vmatmul.mubr.msk.bf16.vlgmr.msra.gmra.mxu0 %vm23_vm3, %v15_v10  ;;  %233 = vperm.xlu0 %294, %v230_v12  }
   0x9   :  { %275 = vmatmul.mubr.msk.bf16.vlgmr.msra.gmra.mxu1 %vm23_vm3, %v15_v10  ;;  %279 = vmatpush3.bf16.msra.mxu0 %v135_v11 }
   0xa   :  { %285 = vmatpush3.bf16.msra.mxu1 %v187_v13  ;;  %280 = vmatprep.mubr.msk.bf16.mxu0 %vm301_vm2, %v299_v0 }
   0xb   :  { %286 = vmatprep.mubr.msk.bf16.mxu1 %vm301_vm2, %v299_v0 }
  0x10   :  { %281 = vmatmul.mubr.msk.bf16.vlgmr.msra.gmra.mxu0 %vm23_vm3, %v15_v10 }
  0x11   :  { %287 = vmatmul.mubr.msk.bf16.vlgmr.msra.gmra.mxu1 %vm23_vm3, %v15_v10 }
  0x83   :  { %v234_v28 = vpop.permute.xlu0 %233 }
  0xc8   :  { %v68_v15 = vpop.f32.mrf.mxu0 }
  0xc9   :  { %v119_v16 = vpop.f32.mrf.mxu1 }
  0xca   :  { %v270_v17 = vpop.f32.mrf.mxu0  ;;  %v125_v22 = vmax.f32 %v68_v15, %v119_v16 }
  0xcb   :  { %v276_v18 = vpop.f32.mrf.mxu1 }
  0xcc   :  { %v71_v19 = vpop.f32.mrf.mxu0 }
  0xcd   :  { %v122_v20 = vpop.f32.mrf.mxu1 }
  0xce   :  { %v271_v21 = vpop.f32.mrf.mxu0 }
  0xcf   :  { %v277_v23 = vpop.f32.mrf.mxu1 }
  0xd0   :  { %v171_v24 = vpop.f32.mrf.mxu0 }
  0xd1   :  { %v177_v25 = vmax.f32 %v125_v22, %v171_v24  ;;  %v223_v26 = vpop.f32.mrf.mxu1 }
  0xd2   :  { %v282_v27 = vpop.f32.mrf.mxu0 }
  0xd3   :  { %v229_v29 = vmax.f32 %v177_v25, %v223_v26  ;;  %v288_v30 = vpop.f32.mrf.mxu1 }
  0xd4   :  { %v174_v31 = vpop.f32.mrf.mxu0 }
  0xd5   :  { %v236_v32 = vadd.f32 %v234_v28, %v229_v29  ;;  %v226_v33 = vpop.f32.mrf.mxu1 }
  0xd6   :  { %v283_v34 = vpop.f32.mrf.mxu0 }
  0xd7   :  { %v237_v35 = vmax.f32 %v236_v32, 0.0  ;;  %v289_v36 = vpop.f32.mrf.mxu1 }
  0xd9   :  { %v238_v37 = vpack.c.bf16 %v237_v35, %v237_v35 }
  0xdb   :  { %239 = vst [vmem:[%s355_s3] sm:$0xf] %v238_v37 }

// kernel: hyper_encoder.3
= control target key start
LH: loop header
LB: loop body
LE: loop exit
PB: predicated region body
PF: predicated region fallthrough
CT: control target
= control target key end

     0   :  { %vm45_vm0 = vcmask 1044480   ;;  %vm46_vm1 = vcmask 1045504   ;;  %v513_v0 = vmov 0.0   ;;  %v514_v2 = vmov 65535   ;;  %s633_s0 = inlined_call_operand.vmem [shape: bf16[4,11,128], index: 0, kind: input, shape index: {}]   ;;  %s634_s1 = inlined_call_operand.vmem [shape: bf16[8,11], index: 1, kind: input, shape index: {}]   ;;  %s635_s2 = inlined_call_operand.vmem [shape: f32[8,1], index: 2, kind: input, shape index: {}]   ;;  %s636_s4 = inlined_call_operand.vmem [shape: f32[6,1], index: 4, kind: input, shape index: {}]   ;;  %s637_s3 = inlined_call_operand.vmem [shape: bf16[6,8], index: 3, kind: input, shape index: {}]   ;;  %s638_s6 = inlined_call_operand.vmem [shape: f32[6,1], index: 6, kind: input, shape index: {}]   ;;  %s639_s8 = inlined_call_operand.vmem [shape: f32[6,1], index: 8, kind: input, shape index: {}]   ;;  %s640_s5 = inlined_call_operand.vmem [shape: bf16[6,6], index: 5, kind: input, shape index: {}]   ;;  %s641_s7 = inlined_call_operand.vmem [shape: bf16[6,6], index: 7, kind: input, shape index: {}]   ;;  %s642_s9 = inlined_call_operand.vmem [shape: f32[6,128], index: 9, kind: output, shape index: {}]  }
   0x1   :  { %461 = vmatprep.subr.bf16.mxu0 %v513_v0  ;;  %467 = vmatprep.subr.bf16.mxu1 %v513_v0  ;;  %v509_v1 = vld [vmem:[%s633_s0] sm:$0x3f]   ;;  %v47_v3 = vsel %vm45_vm0, 4294967295, %v514_v2  ;;  %v510_v5 = vld [vmem:[%s633_s0 + $0x8] sm:$0x3f]   ;;  %vm515_vm2 = vmmov 0  }
   0x2   :  { %v48_v4 = vsel %vm46_vm1, %v47_v3, 0  ;;  %463 = vmatprep.mubr.msk.bf16.mxu0 %vm515_vm2, %v513_v0  ;;  %469 = vmatprep.mubr.msk.bf16.mxu1 %vm515_vm2, %v513_v0  ;;  %v511_v7 = vld [vmem:[%s633_s0 + $0x10] sm:$0x3f]   ;;  %v512_v9 = vld [vmem:[%s633_s0 + $0x18] sm:$0x3f]   ;;  %vm41_vm3 = vcmask 89088  }
   0x3   :  { %v50_v6 = vand.u32 %v509_v1, %v48_v4  ;;  %v101_v8 = vand.u32 %v510_v5, %v48_v4  ;;  %v33_v10 = vld [vmem:[%s634_s1] sm:$0xf]  ;;  %v153_v11 = vand.u32 %v511_v7, %v48_v4  ;;  %v205_v13 = vand.u32 %v512_v9, %v48_v4 }
   0x4   :  { %v248_v12 = vld [vmem:[%s635_s2] sm:$0xff]  ;;  %v516_v14 = vmov 0   ;;  %vm268_vm4 = vcmask 1043456   ;;  %vm264_vm5 = vcmask 64512   ;;  %vm325_vm6 = vcmask 1042432  }
   0x5   :  { %462 = vmatpush3.bf16.msra.mxu0 %v50_v6  ;;  %468 = vmatpush3.bf16.msra.mxu1 %v101_v8  ;;  %v258_v15 = vld [vmem:[%s636_s4] sm:$0x3f]  ;;  %vm321_vm7 = vcmask 48128  }
   0x6   :  { %473 = vmatprep.subr.bf16.mxu0 %v513_v0  ;;  %479 = vmatprep.subr.bf16.mxu1 %v513_v0  ;;  %v256_v40 = vld [vmem:[%s637_s3] sm:$0x7] }
   0x7   :  { %507 = vset.pattern.permute.xlu0 %v516_v14  ;;  %508 = vset.pattern.permute.xlu1 %v516_v14  ;;  %v315_v41 = vld [vmem:[%s638_s6] sm:$0x3f] }
   0x8   :  { %464 = vmatmul.mubr.msk.bf16.vlgmr.msra.gmra.mxu0 %vm41_vm3, %v33_v10  ;;  %251 = vperm.xlu0 %507, %v248_v12   ;;  %v372_v42 = vld [vmem:[%s639_s8] sm:$0x3f] }
   0x9   :  { %470 = vmatmul.mubr.msk.bf16.vlgmr.msra.gmra.mxu1 %vm41_vm3, %v33_v10  ;;  %474 = vmatpush3.bf16.msra.mxu0 %v153_v11  ;;  %v313_v52 = vld [vmem:[%s640_s5] sm:$0x7] }
   0xa   :  { %480 = vmatpush3.bf16.msra.mxu1 %v205_v13  ;;  %475 = vmatprep.mubr.msk.bf16.mxu0 %vm515_vm2, %v513_v0  ;;  %v370_v62 = vld [vmem:[%s641_s7] sm:$0x7] }
   0xb   :  { %481 = vmatprep.mubr.msk.bf16.mxu1 %vm515_vm2, %v513_v0  ;;  %485 = vmatprep.subr.bf16.mxu0 %v513_v0 }
   0xc   :  { %261 = vperm.xlu0 %507, %v258_v15   ;;  %491 = vmatprep.subr.bf16.mxu1 %v513_v0 }
   0xd   :  { %318 = vperm.xlu1 %508, %v315_v41  }
  0x10   :  { %476 = vmatmul.mubr.msk.bf16.vlgmr.msra.gmra.mxu0 %vm41_vm3, %v33_v10 }
  0x11   :  { %482 = vmatmul.mubr.msk.bf16.vlgmr.msra.gmra.mxu1 %vm41_vm3, %v33_v10  ;;  %487 = vmatprep.mubr.msk.bf16.mxu0 %vm515_vm2, %v513_v0 }
  0x12   :  { %493 = vmatprep.mubr.msk.bf16.mxu1 %vm515_vm2, %v513_v0  ;;  %375 = vperm.xlu1 %508, %v372_v42  }
  0x83   :  { %v252_v31 = vpop.permute.xlu0 %251 }
  0x87   :  { %v262_v43 = vpop.permute.xlu0 %261 }
  0x88   :  { %v319_v53 = vpop.permute.xlu1 %318 }
  0x8d   :  { %v376_v63 = vpop.permute.xlu1 %375 }
  0xc8   :  { %v86_v16 = vpop.f32.mrf.mxu0 }
  0xc9   :  { %v137_v17 = vpop.f32.mrf.mxu1 }
  0xca   :  { %v465_v18 = vpop.f32.mrf.mxu0  ;;  %v143_v23 = vmax.f32 %v86_v16, %v137_v17 }
  0xcb   :  { %v471_v19 = vpop.f32.mrf.mxu1 }
  0xcc   :  { %v89_v20 = vpop.f32.mrf.mxu0 }
  0xcd   :  { %v140_v21 = vpop.f32.mrf.mxu1 }
  0xce   :  { %v466_v22 = vpop.f32.mrf.mxu0 }
  0xcf   :  { %v472_v24 = vpop.f32.mrf.mxu1 }
  0xd0   :  { %v189_v25 = vpop.f32.mrf.mxu0 }
  0xd1   :  { %v195_v26 = vmax.f32 %v143_v23, %v189_v25  ;;  %v241_v27 = vpop.f32.mrf.mxu1 }
  0xd2   :  { %v477_v28 = vpop.f32.mrf.mxu0 }
  0xd3   :  { %v247_v29 = vmax.f32 %v195_v26, %v241_v27  ;;  %v483_v30 = vpop.f32.mrf.mxu1 }
  0xd4   :  { %v192_v32 = vpop.f32.mrf.mxu0 }
  0xd5   :  { %v254_v33 = vadd.f32 %v252_v31, %v247_v29  ;;  %v244_v34 = vpop.f32.mrf.mxu1 }
  0xd6   :  { %v478_v35 = vpop.f32.mrf.mxu0 }
  0xd7   :  { %v255_v36 = vmax.f32 %v254_v33, 0.0  ;;  %v484_v37 = vpop.f32.mrf.mxu1 }
  0xd9   :  { %v257_v38 = vpack.c.bf16 %v255_v36, %v255_v36 }
  0xdb   :  { %v270_v39 = vsel %vm268_vm4, %v257_v38, 0 }
  0xdc   :  { %486 = vmatpush3.bf16.msra.mxu0 %v270_v39 }
  0xdd   :  { %497 = vmatprep.subr.bf16.mxu0 %v513_v0 }
  0xdf   :  { %488 = vmatmul.mubr.msk.bf16.vlgmr.msra.gmra.mxu0 %vm264_vm5, %v256_v40 }
  0xe0   :  { %499 = vmatprep.mubr.msk.bf16.mxu0 %vm515_vm2, %v513_v0 }
 0x19f   :  { %v306_v44 = vpop.f32.mrf.mxu0 }
 0x1a0   :  { %v307_v45 = vadd.f32 %v306_v44, %v262_v43 }
 0x1a1   :  { %v489_v46 = vpop.f32.mrf.mxu0 }
 0x1a2   :  { %v312_v47 = vmax.f32 %v307_v45, 0.0 }
 0x1a3   :  { %v309_v48 = vpop.f32.mrf.mxu0 }
 0x1a4   :  { %v314_v49 = vpack.c.bf16 %v312_v47, %v312_v47 }
 0x1a5   :  { %v490_v50 = vpop.f32.mrf.mxu0 }
 0x1a6   :  { %v327_v51 = vsel %vm325_vm6, %v314_v49, 0 }
 0x1a7   :  { %492 = vmatpush3.bf16.msra.mxu1 %v327_v51 }
 0x1aa   :  { %494 = vmatmul.mubr.msk.bf16.vlgmr.msra.gmra.mxu1 %vm321_vm7, %v313_v52 }
 0x26a   :  { %v363_v54 = vpop.f32.mrf.mxu1 }
 0x26b   :  { %v364_v55 = vadd.f32 %v363_v54, %v319_v53 }
 0x26c   :  { %v495_v56 = vpop.f32.mrf.mxu1 }
 0x26d   :  { %v369_v57 = vmax.f32 %v364_v55, 0.0 }
 0x26e   :  { %v366_v58 = vpop.f32.mrf.mxu1 }
 0x26f   :  { %v371_v59 = vpack.c.bf16 %v369_v57, %v369_v57 }
 0x270   :  { %v496_v60 = vpop.f32.mrf.mxu1 }
 0x271   :  { %v382_v61 = vsel %vm325_vm6, %v371_v59, 0 }
 0x272   :  { %498 = vmatpush3.bf16.msra.mxu0 %v382_v61 }
 0x275   :  { %500 = vmatmul.mubr.msk.bf16.vlgmr.msra.gmra.mxu0 %vm321_vm7, %v370_v62 }
 0x335   :  { %v418_v0 = vpop.f32.mrf.mxu0 }
 0x336   :  { %v419_v1 = vadd.f32 %v418_v0, %v376_v63 }
 0x337   :  { %v501_v2 = vpop.f32.mrf.mxu0 }
 0x338   :  { %v424_v3 = vmax.f32 %v419_v1, 0.0 }
 0x339   :  { %v421_v4 = vpop.f32.mrf.mxu0 }
 0x33a   :  { %425 = vst [vmem:[%s642_s9] sm:$0x3f] %v424_v3 }
 0x33b   :  { %v502_v5 = vpop.f32.mrf.mxu0 }

</bundles_post_ra>
